<compile_context>
chip_gen: v5e
topology: v5e:2x2
jax: 0.10.0
libtpu: 0.0.40
codegen_flags: <defaults>
</compile_context>

<pallas_src>
import functools

import jax
import jax.numpy as jnp
from jax import lax
from jax.experimental import pallas as pl
from jax.experimental.pallas import tpu as pltpu

EPS = 1e-08

# VMEM budgets (conservative so the same numbers work on v5e/v6e/v7x; v7x has
# only 64 MiB physical VMEM).
_DEFAULT_TILE_BYTES = 4 * 1024 * 1024         # per (1, N, TK) y tile (two-pass)
_DEFAULT_FUSED_SLAB_BYTES = 6 * 1024 * 1024   # per-batch resident (1, N, K) slab
_VMEM_LIMIT_BYTES = 48 * 1024 * 1024          # scoped VMEM cap


def _compiler_params(dimension_semantics):
    return pltpu.CompilerParams(dimension_semantics=dimension_semantics,
                                vmem_limit_bytes=_VMEM_LIMIT_BYTES)


def _partial_moments(y_f32, n, tk, acc_rows):
    """Lane-parallel partial sum / sum-of-squares of a (1, N, TK) f32 tile.

    acc_rows == 8 (N % 8 == 0): the reshape is a pure major-dim split (layout
    no-op), so the reduction is plain VPU vreg adds — no XLU, no relayout.
    acc_rows == 1 (small / ragged N): a small sublane reduce instead.
    The single cross-lane reduce to a scalar happens once, at finalize.
    """
    if acc_rows == 8:
        g = y_f32.reshape(n // 8, 8, tk)
        return jnp.sum(g, axis=0), jnp.sum(g * g, axis=0)          # (8, TK)
    g = y_f32.reshape(n, tk)
    return (jnp.sum(g, axis=0, keepdims=True),                      # (1, TK)
            jnp.sum(g * g, axis=0, keepdims=True))


def _fold_scale_shift(total, total_sq, gamma_f32, beta_f32, inv_count):
    """mean/var -> per-channel scale/shift, shapes (1, N, 1) f32."""
    mean = (total * inv_count).reshape(1, 1, 1)
    # One-pass E[x^2] - mean^2 on lane-parallel f32 partials; clamp guards the
    # tiny negative values cancellation can produce.
    # TODO(synk): Kahan / centered two-level accumulation for very long K or
    # data with a large mean.
    var = jnp.maximum((total_sq * inv_count).reshape(1, 1, 1) - mean * mean, 0.0)
    inv = lax.rsqrt(var + EPS)                                       # EUP, ~free
    scale = gamma_f32 * inv
    shift = beta_f32 - mean * scale
    return scale, shift


# ---------------------------------------------------------------------------
# Fused single-pass kernel: one grid step per batch, slab resident in VMEM.
# ---------------------------------------------------------------------------
def _gln_fused_kernel(y_ref, gamma_ref, beta_ref, o_ref, *, inv_count, n, k,
                      acc_rows):
    y = y_ref[...].astype(jnp.float32)                 # (1, N, K) resident slab
    part_sum, part_sq = _partial_moments(y, n, k, acc_rows)
    total = jnp.sum(part_sum)
    total_sq = jnp.sum(part_sq)
    gamma = gamma_ref[...].astype(jnp.float32)         # (1, N, 1)
    beta = beta_ref[...].astype(jnp.float32)           # (1, N, 1)
    scale, shift = _fold_scale_shift(total, total_sq, gamma, beta, inv_count)
    # Fused multiply-add; no per-element divide, no centered temp.
    # TODO(synk): bf16 multiply-add path on v6e/v7x when y/out are bf16.
    o_ref[...] = (y * scale + shift).astype(o_ref.dtype)


def _gln_fused(y, gamma, beta, *, inv_count):
    M, N, K = y.shape
    acc_rows = 8 if N % 8 == 0 else 1
    kernel = functools.partial(_gln_fused_kernel, inv_count=inv_count, n=N,
                               k=K, acc_rows=acc_rows)
    return pl.pallas_call(
        kernel,
        out_shape=jax.ShapeDtypeStruct((M, N, K), y.dtype),
        grid_spec=pltpu.PrefetchScalarGridSpec(
            num_scalar_prefetch=0,
            grid=(M,),
            in_specs=[
                pl.BlockSpec((1, N, K), lambda m: (m, 0, 0)),   # whole slab
                pl.BlockSpec((1, N, 1), lambda m: (0, 0, 0)),   # gamma
                pl.BlockSpec((1, N, 1), lambda m: (0, 0, 0)),   # beta
            ],
            out_specs=pl.BlockSpec((1, N, K), lambda m: (m, 0, 0)),
        ),
        compiler_params=_compiler_params(("parallel",)),
    )(y, gamma, beta)


# ---------------------------------------------------------------------------
# Two-pass fallback for slabs too large to keep resident in VMEM.
# ---------------------------------------------------------------------------
def _gln_stats_kernel(y_ref, gamma_ref, beta_ref, scale_ref, shift_ref,
                      sum_ref, sq_ref, *, inv_count, n, tk, acc_rows):
    kt = pl.program_id(1)

    @pl.when(kt == 0)
    def _init():
        sum_ref[...] = jnp.zeros_like(sum_ref)
        sq_ref[...] = jnp.zeros_like(sq_ref)

    y = y_ref[...].astype(jnp.float32)                 # (1, N, TK)
    part_sum, part_sq = _partial_moments(y, n, tk, acc_rows)
    sum_ref[...] += part_sum                           # VPU adds only per step
    sq_ref[...] += part_sq

    @pl.when(kt == pl.num_programs(1) - 1)
    def _finalize():
        gamma = gamma_ref[...].astype(jnp.float32)
        beta = beta_ref[...].astype(jnp.float32)
        scale, shift = _fold_scale_shift(jnp.sum(sum_ref[...]),
                                         jnp.sum(sq_ref[...]),
                                         gamma, beta, inv_count)
        scale_ref[...] = scale
        shift_ref[...] = shift


def _gln_apply_kernel(scale_ref, shift_ref, y_ref, o_ref):
    y = y_ref[...].astype(jnp.float32)                 # (1, N, TK)
    o_ref[...] = (y * scale_ref[...] + shift_ref[...]).astype(o_ref.dtype)


def _pick_tk(n, k, target_tile_bytes, itemsize):
    """Largest multiple of 128 dividing K with a (1, N, TK) tile under budget.
    Falls back to full K when K is not 128-aligned (callers gate / pad)."""
    if k % 128 != 0:
        return k
    max_tk = max(128, (target_tile_bytes // max(n * itemsize, 1)) // 128 * 128)
    tk = min(k, max_tk)
    while k % tk != 0:
        tk -= 128
    # TODO(synk): mask a ragged tail instead of collapsing TK for awkward K.
    return tk


def _gln_two_pass(y, gamma, beta, *, inv_count, target_tile_bytes):
    M, N, K = y.shape
    itemsize = jnp.dtype(y.dtype).itemsize
    TK = _pick_tk(N, K, target_tile_bytes, itemsize)
    KT = K // TK
    acc_rows = 8 if N % 8 == 0 else 1

    stats_kernel = functools.partial(_gln_stats_kernel, inv_count=inv_count,
                                     n=N, tk=TK, acc_rows=acc_rows)

    # Pass 1: per-batch statistics -> per-channel scale/shift (f32).
    scale, shift = pl.pallas_call(
        stats_kernel,
        out_shape=(jax.ShapeDtypeStruct((M, N, 1), jnp.float32),
                   jax.ShapeDtypeStruct((M, N, 1), jnp.float32)),
        grid_spec=pltpu.PrefetchScalarGridSpec(
            num_scalar_prefetch=0,
            grid=(M, KT),                              # reduction axis (K) last
            in_specs=[
                pl.BlockSpec((1, N, TK), lambda m, kt: (m, 0, kt)),
                pl.BlockSpec((1, N, 1), lambda m, kt: (0, 0, 0)),
                pl.BlockSpec((1, N, 1), lambda m, kt: (0, 0, 0)),
            ],
            out_specs=[
                pl.BlockSpec((1, N, 1), lambda m, kt: (m, 0, 0)),
                pl.BlockSpec((1, N, 1), lambda m, kt: (m, 0, 0)),
            ],
            scratch_shapes=[pltpu.VMEM((acc_rows, TK), jnp.float32),
                            pltpu.VMEM((acc_rows, TK), jnp.float32)],
        ),
        compiler_params=_compiler_params(("parallel", "arbitrary")),
    )(y, gamma, beta)

    # Pass 2: apply normalization, tiled over (batch, K) — fully parallel.
    out = pl.pallas_call(
        _gln_apply_kernel,
        out_shape=jax.ShapeDtypeStruct((M, N, K), y.dtype),
        grid_spec=pltpu.PrefetchScalarGridSpec(
            num_scalar_prefetch=0,
            grid=(M, KT),
            in_specs=[
                pl.BlockSpec((1, N, 1), lambda m, kt: (m, 0, 0)),
                pl.BlockSpec((1, N, 1), lambda m, kt: (m, 0, 0)),
                pl.BlockSpec((1, N, TK), lambda m, kt: (m, 0, kt)),
            ],
            out_specs=pl.BlockSpec((1, N, TK), lambda m, kt: (m, 0, kt)),
        ),
        compiler_params=_compiler_params(("parallel", "parallel")),
    )(scale, shift, y)
    return out


# ---------------------------------------------------------------------------
# Public entry point.
# ---------------------------------------------------------------------------
def global_layer_norm(y, gamma, beta, *,
                      target_tile_bytes=_DEFAULT_TILE_BYTES,
                      max_fused_slab_bytes=_DEFAULT_FUSED_SLAB_BYTES):
    """y: [M, N, K]; gamma, beta: [1, N, 1]. Returns gLN(y): [M, N, K]."""
    M, N, K = y.shape
    itemsize = jnp.dtype(y.dtype).itemsize
    inv_count = 1.0 / float(N * K)
    gamma = jnp.asarray(gamma, dtype=jnp.float32).reshape(1, N, 1)
    beta = jnp.asarray(beta, dtype=jnp.float32).reshape(1, N, 1)

    slab_bytes = N * K * itemsize
    if slab_bytes <= max_fused_slab_bytes:
        # Single HBM read + write of y (per-batch slab resident in VMEM).
        return _gln_fused(y, gamma, beta, inv_count=inv_count)

    # Slab too big to keep resident: two passes over y.
    if K % 128 != 0:
        # TODO(synk): mask the ragged K tail in-kernel instead of padding
        # (padding costs one extra HBM copy of y).  Zero padding keeps the
        # statistics exact: zeros add nothing to sum / sum-of-squares and
        # inv_count uses the true element count.
        k_pad = ((K + 127) // 128) * 128
        y_padded = jnp.pad(y, ((0, 0), (0, 0), (0, k_pad - K)))
        out = _gln_two_pass(y_padded, gamma, beta, inv_count=inv_count,
                            target_tile_bytes=target_tile_bytes)
        return out[:, :, :K]

    return _gln_two_pass(y, gamma, beta, inv_count=inv_count,
                         target_tile_bytes=target_tile_bytes)


def reference_gln(y, gamma, beta):
    mean = y.mean(axis=1, keepdims=True).mean(axis=2, keepdims=True)
    var = ((y - mean) ** 2).mean(axis=1, keepdims=True).mean(axis=2, keepdims=True)
    return gamma * (y - mean) / jnp.sqrt(var + EPS) + beta


if __name__ == "__main__":
    key = jax.random.PRNGKey(0)
    k1, k2, k3, k4, k5, k6 = jax.random.split(key, 6)

    # Case 1: module-consistent small shapes (M=2, N=4, K=16); fused path.
    M, N, K = 2, 4, 16
    y = jax.random.normal(k1, (M, N, K), dtype=jnp.float32)
    gamma = jnp.ones((1, N, 1), dtype=jnp.float32)    # reset_parameters(): 1
    beta = jnp.zeros((1, N, 1), dtype=jnp.float32)    # reset_parameters(): 0
    out = jax.block_until_ready(global_layer_norm(y, gamma, beta))
    ref = reference_gln(y, gamma, beta)
    assert out.shape == (M, N, K)
    assert jnp.allclose(out, ref, atol=1e-5, rtol=1e-5), "mismatch (fused)"

    # Case 2: fused path, 128-aligned K, random affine params.
    M2, N2, K2 = 2, 8, 256
    y2 = jax.random.normal(k2, (M2, N2, K2), dtype=jnp.float32)
    gamma2 = jax.random.normal(k3, (1, N2, 1), dtype=jnp.float32)
    beta2 = jax.random.normal(k4, (1, N2, 1), dtype=jnp.float32)
    out2 = jax.block_until_ready(global_layer_norm(y2, gamma2, beta2))
    ref2 = reference_gln(y2, gamma2, beta2)
    assert out2.shape == (M2, N2, K2)
    assert jnp.allclose(out2, ref2, atol=1e-5, rtol=1e-5), "mismatch (fused, aligned K)"

    # Case 3: force the two-pass fallback with multi-tile K accumulation
    # (TK=128, KT=2) to exercise the accumulator pattern.
    out3 = jax.block_until_ready(
        global_layer_norm(y2, gamma2, beta2, target_tile_bytes=4096,
                          max_fused_slab_bytes=0))
    assert out3.shape == (M2, N2, K2)
    assert jnp.allclose(out3, ref2, atol=1e-5, rtol=1e-5), "mismatch (two-pass)"

    # Case 4: two-pass fallback with non-128-aligned K (pad + slice route).
    M4, N4, K4 = 2, 8, 130
    y4 = jax.random.normal(k5, (M4, N4, K4), dtype=jnp.float32)
    gamma4 = jax.random.normal(k6, (1, N4, 1), dtype=jnp.float32)
    beta4 = jnp.zeros((1, N4, 1), dtype=jnp.float32)
    out4 = jax.block_until_ready(
        global_layer_norm(y4, gamma4, beta4, target_tile_bytes=4096,
                          max_fused_slab_bytes=0))
    ref4 = reference_gln(y4, gamma4, beta4)
    assert out4.shape == (M4, N4, K4)
    assert jnp.allclose(out4, ref4, atol=1e-5, rtol=1e-5), "mismatch (padded two-pass)"

    print("KERNEL_OK")
</pallas_src>

<mosaic_0001>
module attributes {stable_mosaic.version = 11 : i64} {
  func.func @_gln_fused_kernel(%arg0: i32, %arg1: memref<1x4x16xf32, #tpu.memory_space<vmem>>, %arg2: memref<1x4x1xf32, #tpu.memory_space<vmem>>, %arg3: memref<1x4x1xf32, #tpu.memory_space<vmem>>, %arg4: memref<1x4x16xf32, #tpu.memory_space<vmem>>) attributes {dimension_semantics = [#tpu.dimension_semantics<parallel>], iteration_bounds = array<i64: 2>, scalar_prefetch = 0 : i64, scratch_operands = 0 : i64, tpu.core_type = #tpu.core_type<tc>, window_params = [{transform_indices = @transform_0, window_bounds = array<i64: 1, 4, 16>}, {pipeline_mode = #tpu.pipeline_mode<synchronous>, transform_indices = @transform_1, window_bounds = array<i64: 1, 4, 1>}, {pipeline_mode = #tpu.pipeline_mode<synchronous>, transform_indices = @transform_2, window_bounds = array<i64: 1, 4, 1>}, {transform_indices = @transform_3, window_bounds = array<i64: 1, 4, 16>}]} {
    %c0 = arith.constant 0 : index
    %c0_0 = arith.constant 0 : index
    %c0_1 = arith.constant 0 : index
    %0 = vector.load %arg1[%c0, %c0_0, %c0_1] : memref<1x4x16xf32, #tpu.memory_space<vmem>>, vector<1x4x16xf32>
    %1 = vector.shape_cast %0 : vector<1x4x16xf32> to vector<4x16xf32>
    %cst = arith.constant dense<0.000000e+00> : vector<16xf32>
    %2 = vector.multi_reduction <add>, %1, %cst [0] : vector<4x16xf32> to vector<16xf32>
    %3 = vector.shape_cast %2 : vector<16xf32> to vector<1x16xf32>
    %4 = arith.mulf %1, %1 : vector<4x16xf32>
    %cst_2 = arith.constant dense<0.000000e+00> : vector<16xf32>
    %5 = vector.multi_reduction <add>, %4, %cst_2 [0] : vector<4x16xf32> to vector<16xf32>
    %6 = vector.shape_cast %5 : vector<16xf32> to vector<1x16xf32>
    %7 = vector.shape_cast %3 : vector<1x16xf32> to vector<1x1x16xf32>
    %cst_3 = arith.constant dense<0.000000e+00> : vector<1xf32>
    %8 = vector.multi_reduction <add>, %7, %cst_3 [1, 2] : vector<1x1x16xf32> to vector<1xf32>
    %9 = vector.shape_cast %8 : vector<1xf32> to vector<1x1x1xf32>
    %10 = vector.extract %9[0, 0, 0] : f32 from vector<1x1x1xf32>
    %11 = vector.shape_cast %6 : vector<1x16xf32> to vector<1x1x16xf32>
    %cst_4 = arith.constant dense<0.000000e+00> : vector<1xf32>
    %12 = vector.multi_reduction <add>, %11, %cst_4 [1, 2] : vector<1x1x16xf32> to vector<1xf32>
    %13 = vector.shape_cast %12 : vector<1xf32> to vector<1x1x1xf32>
    %14 = vector.extract %13[0, 0, 0] : f32 from vector<1x1x1xf32>
    %c0_5 = arith.constant 0 : index
    %c0_6 = arith.constant 0 : index
    %c0_7 = arith.constant 0 : index
    %15 = vector.load %arg2[%c0_5, %c0_6, %c0_7] : memref<1x4x1xf32, #tpu.memory_space<vmem>>, vector<1x4x1xf32>
    %c0_8 = arith.constant 0 : index
    %c0_9 = arith.constant 0 : index
    %c0_10 = arith.constant 0 : index
    %16 = vector.load %arg3[%c0_8, %c0_9, %c0_10] : memref<1x4x1xf32, #tpu.memory_space<vmem>>, vector<1x4x1xf32>
    %cst_11 = arith.constant 1.562500e-02 : f32
    %17 = arith.mulf %10, %cst_11 : f32
    %18 = vector.broadcast %17 : f32 to vector<1x1x1xf32>
    %cst_12 = arith.constant 1.562500e-02 : f32
    %19 = arith.mulf %14, %cst_12 : f32
    %20 = vector.broadcast %19 : f32 to vector<1x1x1xf32>
    %21 = arith.mulf %18, %18 : vector<1x1x1xf32>
    %22 = arith.subf %20, %21 : vector<1x1x1xf32>
    %cst_13 = arith.constant 0.000000e+00 : f32
    %23 = vector.broadcast %cst_13 : f32 to vector<1x1x1xf32>
    %24 = arith.maximumf %22, %23 : vector<1x1x1xf32>
    %cst_14 = arith.constant 9.99999993E-9 : f32
    %25 = vector.broadcast %cst_14 : f32 to vector<1x1x1xf32>
    %26 = arith.addf %24, %25 : vector<1x1x1xf32>
    %27 = math.rsqrt %26 : vector<1x1x1xf32>
    %28 = vector.broadcast %27 : vector<1x1x1xf32> to vector<1x4x1xf32>
    %29 = arith.mulf %15, %28 : vector<1x4x1xf32>
    %30 = vector.broadcast %18 : vector<1x1x1xf32> to vector<1x4x1xf32>
    %31 = arith.mulf %30, %29 : vector<1x4x1xf32>
    %32 = arith.subf %16, %31 : vector<1x4x1xf32>
    %33 = vector.broadcast %29 : vector<1x4x1xf32> to vector<1x4x16xf32>
    %34 = arith.mulf %0, %33 : vector<1x4x16xf32>
    %35 = vector.broadcast %32 : vector<1x4x1xf32> to vector<1x4x16xf32>
    %36 = arith.addf %34, %35 : vector<1x4x16xf32>
    %c0_15 = arith.constant 0 : index
    %c0_16 = arith.constant 0 : index
    %c0_17 = arith.constant 0 : index
    %37 = vector.load %arg4[%c0_15, %c0_16, %c0_17] : memref<1x4x16xf32, #tpu.memory_space<vmem>>, vector<1x4x16xf32>
    tpu.vector_store %arg4[%c0_15, %c0_16, %c0_17], %36 {strides = array<i32>} : memref<1x4x16xf32, #tpu.memory_space<vmem>>, vector<1x4x16xf32>,
    return
  }
  func.func @transform_0(%arg0: i32) -> (i32, i32, i32) {
    %c0_i32 = arith.constant 0 : i32
    %c0_i32_0 = arith.constant 0 : i32
    %c0_i32_1 = arith.constant 0 : i32
    return %arg0, %c0_i32, %c0_i32_0 : i32, i32, i32
  }
  func.func @transform_1(%arg0: i32) -> (i32, i32, i32) {
    %c0_i32 = arith.constant 0 : i32
    %c0_i32_0 = arith.constant 0 : i32
    %c0_i32_1 = arith.constant 0 : i32
    %c0_i32_2 = arith.constant 0 : i32
    return %c0_i32, %c0_i32_0, %c0_i32_1 : i32, i32, i32
  }
  func.func @transform_2(%arg0: i32) -> (i32, i32, i32) {
    %c0_i32 = arith.constant 0 : i32
    %c0_i32_0 = arith.constant 0 : i32
    %c0_i32_1 = arith.constant 0 : i32
    %c0_i32_2 = arith.constant 0 : i32
    return %c0_i32, %c0_i32_0, %c0_i32_1 : i32, i32, i32
  }
  func.func @transform_3(%arg0: i32) -> (i32, i32, i32) {
    %c0_i32 = arith.constant 0 : i32
    %c0_i32_0 = arith.constant 0 : i32
    %c0_i32_1 = arith.constant 0 : i32
    return %arg0, %c0_i32, %c0_i32_0 : i32, i32, i32
  }
}

</mosaic_0001>

<bundles_post_ra>
// kernel: tpu_custom_call.1
= control target key start
LH: loop header
LB: loop body
LE: loop exit
PB: predicated region body
PF: predicated region fallthrough
CT: control target
= control target key end

     0   :  { %8 = vsyncpa [#allocation3], 0  ;;  %s558_s0 = inlined_call_operand.vmem [shape: f32[2,4,16], index: 0, kind: input, shape index: {}]   ;;  %s559_s1 = inlined_call_operand.vmem [shape: f32[1,4,1], index: 1, kind: input, shape index: {}]   ;;  %s560_s2 = inlined_call_operand.vmem [shape: f32[1,4,1], index: 2, kind: input, shape index: {}]   ;;  %s561_s3 = inlined_call_operand.hbm [shape: f32[2,4,16], index: 3, kind: output, shape index: {}]  }
   0x1   :  { %10 = vsyncpa [#allocation3 + $0x1], 0  ;;  %s458_s12 = smov 0   ;;  %s460_s13 = smov 0  }
   0x2   :  { %s462_s14 = smov 0   ;;  %s464_s15 = smov 0  }
   0x3 LB: > { %s479_s16 = sadd.s32 4294967295, %s435_s15   ;;  %s315_s17 = sadd.s32 4294967294, %s435_s15   ;;  %s435_s15 = sphi %s464_s15, %s567_s15   ;;  %s431_s14 = sphi %s462_s14, %s566_s14   ;;  %s427_s13 = sphi %s460_s13, %s565_s13   ;;  %s423_s12 = sphi %s458_s12, %s564_s12  }
   0x4   : > { %s483_s18 = sadd.s32 1, %s435_s15   ;;  %s91_s19 = sadd.s32 1, %s431_s14 }
   0x5   : > { %s88_s20 = ssub.s32 %s435_s15, %s483_s18  ;;  %p101_p0 = scmp.ne.s32.totalorder %s431_s14, %s427_s13 }
   0x6   : > { %p89_p1 = scmp.eq.s32.totalorder %s88_s20, 0  ;;  %p102_p2 = scmp.eq.s32.totalorder %s479_s16, 1 }
   0x7   : > { %p107_p3 = scmp.ne.s32.totalorder %s427_s13, %s423_s12  ;;  %p108_p4 = scmp.eq.s32.totalorder %s315_s17, 1 }
   0x8   : > { %s494_s21 = scalar_select %p89_p1, %s431_s14, %s91_s19  }
   0x9   : > { %p496_p5 = por %p102_p2, %p101_p0  ;;  %p500_p6 = por %p108_p4, %p107_p3 }
   0xa   : > { %p318_p7 = scmp.ge.s32.totalorder %s435_s15, 1  ;;  %p139_p8 = scmp.lt.s32.totalorder %s435_s15, 3 }
   0xc   : > { %p140_p9 = pnand %p318_p7, %p139_p8 }
   0xd   : > { %p162_p10 = scmp.lt.s32.totalorder (!%p140_p9), %s479_s16, 1  ;;  %s159_s10 = sand.u32 (!%p140_p9), 1, %s427_s13  }
   0xe   : > { %143 = sbr.rel (%p140_p9) target bundleno = 381 (0x17d), region = 32  ;;  %s319_s11 = sshll.u32 (!%p140_p9), %s159_s10, 2 }
   0xf   : > { %s322_s17 = sshll.u32 (!%p140_p9), %s479_s16, 2 }
  0x13   : > { %s163_s24 = scalar_select %p162_p10, %s479_s16, 1  ;;  %vm167_vm0 = vcmask 125952   ;;  %vm183_vm1 = vcmask 122880   ;;  %v437_v32 = vmov 0   ;;  %v204_v44 = vld [vmem:[%s559_s1] sm:$0xf] }
  0x14   : > { %369 = vset.pattern.permute.xlu1 %v437_v32  ;;  %370 = vset.pattern.permute.xlu0 %v437_v32  ;;  %v205_v49 = vld [vmem:[%s560_s2] sm:$0xf] }
  0x15   : > { %s320_s25 = sshll.u32 %s163_s24, 2  ;;  %s251_s24 = scalar_lea.hbm %s561_s3, %s322_s17 }
  0x16   : > { %s165_s28 = scalar_lea.vmem %s558_s0, %s320_s25  ;;  %s161_s25 = scalar_lea.vmem [#allocation2], %s319_s11 }
  0x17   : > { %v511_v0 = vld [vmem:[%s165_s28] sm:$0xf]  ;;  %s253_s26 = sshll.u32 %s161_s25, 4  ;;  %s255_s27 = sshll.u32 %s251_s24, 4  ;;  %s254_s26 = int_to_ptr.vmem [resolvable:$true] %s253_s26  ;;  %s256_s27 = int_to_ptr.hbm [resolvable:$true] %s255_s27 }
  0x18   : > { %v168_v1 = vsel %vm167_vm0, %v511_v0, 0.0  ;;  %v175_v2 = vmul.f32 %v511_v0, %v511_v0  ;;  %s241_s28 = scalar_lea.sflag [#allocation3], %s159_s10 }
  0x19   : > { %v169_v3 = vrot.slane %v168_v1, 4 }
  0x1a   : > { %v176_v4 = vsel %vm167_vm0, %v175_v2, 0.0 }
  0x1b   : > { %v170_v5 = vadd.f32 %v169_v3, %v168_v1  ;;  %v177_v6 = vrot.slane %v176_v4, 4 }
  0x1d   : > { %v171_v7 = vrot.slane %v170_v5, 2  ;;  %v178_v8 = vadd.f32 %v177_v6, %v176_v4 }
  0x1f   : > { %v172_v9 = vadd.f32 %v171_v7, %v170_v5  ;;  %v179_v10 = vrot.slane %v178_v8, 2 }
  0x21   : > { %v173_v11 = vrot.slane %v172_v9, 1  ;;  %v180_v12 = vadd.f32 %v179_v10, %v178_v8 }
  0x23   : > { %v174_v13 = vadd.f32 %v173_v11, %v172_v9  ;;  %v181_v14 = vrot.slane %v180_v12, 1 }
  0x25   : > { %v184_v15 = vsel %vm183_vm1, %v174_v13, 0.0  ;;  %v182_v16 = vadd.f32 %v181_v14, %v180_v12 }
  0x26   : > { %185 = vadd.xlane.f32.xlu0 %v184_v15 }
  0x27   : > { %v194_v17 = vsel %vm183_vm1, %v182_v16, 0.0 }
  0x2e   : > { %195 = vadd.xlane.f32.xlu0 %v194_v17 }
  0x99   : > { %v186_v18 = vpop.xlane.xlu0 %185 }
  0x9a   : > { %v187_v19 = vrot.slane %v186_v18, 4 }
  0x9c   : > { %v188_v20 = vadd.f32 %v187_v19, %v186_v18 }
  0x9e   : > { %v189_v21 = vrot.slane %v188_v20, 2 }
  0xa0   : > { %v190_v22 = vadd.f32 %v189_v21, %v188_v20 }
  0xa1   : > { %v196_v23 = vpop.xlane.xlu0 %195 }
  0xa2   : > { %v197_v24 = vrot.slane %v196_v23, 4  ;;  %v191_v25 = vrot.slane %v190_v22, 1 }
  0xa4   : > { %v198_v26 = vadd.f32 %v197_v24, %v196_v23  ;;  %v192_v27 = vadd.f32 %v191_v25, %v190_v22 }
  0xa6   : > { %v199_v28 = vrot.slane %v198_v26, 2  ;;  %325 = vpush %v192_v27 }
  0xa8   : > { %v200_v29 = vadd.f32 %v199_v28, %v198_v26 }
  0xaa   : > { %v201_v30 = vrot.slane %v200_v29, 1 }
  0xac   : > { %v202_v31 = vadd.f32 %v201_v30, %v200_v29 }
  0xae   : > { %327 = vpush %v202_v31 }
  0xd7   : > { %s326_s29 = spop %325 }
  0xd8   : > { %s206_s30 = smul.f32 0.015625, %s326_s29  ;;  %s387_s29 = sshra.s32 %s256_s27, 4  ;;  %s388_s29 = int_to_ptr.hbm [resolvable:$true] %s387_s29 }
  0xd9   : > { %s389_s16 = scalar_lea.hbm %s388_s29, 4  ;;  %p394_p0 = scmp.lt.s32.totalorder %s388_s29, %s561_s3 }
  0xda   : > { %v207_v33 = vstv %s206_s30  ;;  %p390_p11 = scmp.ne.s32.totalorder %s388_s29, %s389_s16 }
  0xdb   : > { %v210_v34 = vmul.f32 %v207_v33, %v207_v33 }
  0xdc   : > { %p391_p12 = pnand %p390_p11, %p496_p5 }
  0xde   : > { %p392_p13 = pneg %p391_p12 }
  0xdf   : > { %s328_s4 = spop %327 }
  0xe0   : > { %s208_s5 = smul.f32 0.015625, %s328_s4 }
  0xe2   : > { %v209_v35 = vstv %s208_s5  ;;  %s393_s5 = scalar_lea.hbm %s561_s3, 8 }
  0xe3   : > { %v211_v36 = vsub.f32 %v209_v35, %v210_v34  ;;  %p395_p1 = scmp.lt.s32.totalorder %s393_s5, %s389_s16 }
  0xe5   : > { %v212_v37 = vmax.f32 %v211_v36, 0.0  ;;  %p396_p2 = por %p395_p1, %p394_p0 }
  0xe7   : > { %v213_v38 = vadd.f32 1e-08, %v212_v37  ;;  %p397_p3 = pnand %p396_p2, %p392_p13 }
  0xe9   : > { %371 = vrsqrt.f32 %v213_v38  ;;  %vm220_vm3 = vweird.f32 %v213_v38 }
  0xef   : > { %v372_v39 = vpop.eup %371 }
  0xf0   : > { %v215_v40 = vmul.f32 %v372_v39, %v213_v38  ;;  %vm221_vm2 = vweird.f32 %v372_v39 }
  0xf1   : > { %vm222_vm4 = vmor %vm220_vm3, %vm221_vm2 }
  0xf2   : > { %v216_v41 = vmul.f32 %v372_v39, %v215_v40 }
  0xf4   : > { %v217_v42 = vmul.f32 0.5, %v216_v41 }
  0xf6   : > { %v218_v43 = vsub.f32 1.5, %v217_v42 }
  0xf8   : > { %v219_v45 = vmul.f32 %v372_v39, %v218_v43 }
  0xfa   : > { %v223_v46 = vsel %vm222_vm4, %v372_v39, %v219_v45 }
  0xfb   : > { %v224_v47 = vmul.f32 %v223_v46, %v204_v44 }
  0xfd   : > { %229 = vperm.xlu1 %369, %v224_v47   ;;  %v225_v48 = vmul.f32 %v224_v47, %v207_v33 }
  0xff   : > { %v226_v50 = vsub.f32 %v205_v49, %v225_v48 }
 0x105   : > { %235 = vperm.xlu1 %369, %v226_v50  }
 0x16f   : > { %v230_v51 = vpop.permute.xlu1 %229 }
 0x170   : > { %v232_v52 = vmul.f32 %v230_v51, %v511_v0 }
 0x177   : > { %v236_v53 = vpop.permute.xlu1 %235 }
 0x178   : > { %v238_v54 = vadd.f32 %v236_v53, %v232_v52 }
 0x17a   : > { %239 = vst.msk [vmem:[%s161_s25] sm:$0xf] %vm167_vm0, %v238_v54 }
 0x17b   : > { %400 = shalt.err (!%p397_p3)
}
 0x17c   : > { %329 = dma.vmem_to_hbm [thread:$0]  (%p496_p5), %s254_s26, 64, %s256_s27, %s241_s28  }
 0x17d PF: > { %p335_p4 = scmp.ge.s32.totalorder %s435_s15, 2  ;;  %s267_s8 = sand.u32 1, %s423_s12  }
 0x17e   : > { %s268_s9 = scalar_lea.sflag [#allocation3], %s267_s8 }
 0x17f   : > { %p332_p7 = pnand %p335_p4, %p500_p6 }
 0x181   : > { %p333_p8 = pneg %p332_p7 }
 0x183   : > { %418 = dma.done.wait (%p333_p8), %s268_s9, 64  }
 0x184   : > { %420 = vsyncadd (%p333_p8), %s268_s9, 4294967232  ;;  %p13_p9 = scmp.ge.s32.totalorder %s483_s18, 4   ;;  %s564_s12 = smov %s427_s13 }
 0x185   : > { %s565_s13 = smov %s431_s14  ;;  %s566_s14 = smov %s494_s21 }
 0x186   : > { %s567_s15 = smov %s483_s18  ;;  %15 = sbr.rel (!%p13_p9) target bundleno = 3 (0x3), region = 67 }
 0x18b   :  { %274 = vsyncpa [#allocation3], 1 }
 0x18c   :  { %276 = vsyncpa [#allocation3 + $0x1], 1 }

</bundles_post_ra>
